<compile_context>
chip_gen: v7x
topology: tpu7x:2x2x1
jax: 0.10.0
libtpu: 0.0.40
codegen_flags: <defaults>
</compile_context>

<pallas_src>
import jax
import jax.numpy as jnp
from jax.experimental import pallas as pl
from jax.experimental.pallas import tpu as pltpu


def _round_up(n, m):
    return ((n + m - 1) // m) * m


def grp_kernel(maxlen_ref, len_ref, xp_ref,
               whh0_ref, bhh0n_ref,
               wih1_ref, bih1rz_ref, whh1_ref, bhh1n_ref,
               fc1w_ref, fc1b_ref, fc2w_ref, fc2b_ref,
               o_ref, h1_ref, h2_ref):
    TC, TB, _ = xp_ref.shape
    H = whh0_ref.shape[0]

    blk = pl.program_id(0)
    chunk = pl.program_id(1)
    chunk_start = chunk * TC

    # ---- carried hidden state: init once per batch tile ----
    @pl.when(chunk == 0)
    def _init():
        h1_ref[...] = jnp.zeros_like(h1_ref)
        h2_ref[...] = jnp.zeros_like(h2_ref)

    def sigmoid(v):                       # single EUP op instead of exp+recip
        return 0.5 * jnp.tanh(0.5 * v) + 0.5

    lengths = len_ref[...]                # (TB, 1) int32
    whh0 = whh0_ref[...]                  # bf16 (H, 3H)
    wih1 = wih1_ref[...]                  # bf16 (H, 3H)
    whh1 = whh1_ref[...]                  # bf16 (H, 3H)
    bhh0n = bhh0n_ref[...]                # f32 (1, H)
    bih1rz = bih1rz_ref[...]              # f32 (1, 3H)  (b_ih1 + [b_hh1_r, b_hh1_z, 0])
    bhh1n = bhh1n_ref[...]                # f32 (1, H)

    # ---- run the recurrent steps only for chunks that contain valid steps ----
    @pl.when(chunk_start < maxlen_ref[blk])
    def _compute():
        def gru_cell(gi, h_prev, whh, bhhn):
            # PyTorch GRU gate order [r, z, n]; gi already holds W_ih x + b_ih
            # (+ b_hh for the r/z slices).  bf16 MXU operands, f32 accumulate.
            gh = jnp.dot(h_prev.astype(jnp.bfloat16), whh,
                         preferred_element_type=jnp.float32)
            r = sigmoid(gi[:, 0:H] + gh[:, 0:H])
            z = sigmoid(gi[:, H:2 * H] + gh[:, H:2 * H])
            n = jnp.tanh(gi[:, 2 * H:3 * H] + r * (gh[:, 2 * H:3 * H] + bhhn))
            return (1.0 - z) * n + z * h_prev

        def step(t, carry):
            h1, h2 = carry
            valid = (chunk_start + t) < lengths          # (TB,1): freeze on pad
            gi1 = xp_ref[t].astype(jnp.float32)          # (TB, 3H), bias pre-folded
            h1n = jnp.where(valid, gru_cell(gi1, h1, whh0, bhh0n), h1)
            gi2 = jnp.dot(h1n.astype(jnp.bfloat16), wih1,
                          preferred_element_type=jnp.float32) + bih1rz
            h2n = jnp.where(valid, gru_cell(gi2, h2, whh1, bhh1n), h2)
            return h1n, h2n

        h1, h2 = jax.lax.fori_loop(0, TC, step, (h1_ref[...], h2_ref[...]))
        h1_ref[...] = h1
        h2_ref[...] = h2

    # ---- fc head + output write on the last time chunk ----
    @pl.when(chunk == pl.num_programs(1) - 1)
    def _finalize():
        # state.transpose(0,1).flatten(1): layer-0 hidden then layer-1 hidden
        state = jnp.concatenate([h1_ref[...], h2_ref[...]], axis=-1)   # (TB, 2H)
        hid = jnp.maximum(
            jnp.dot(state.astype(jnp.bfloat16), fc1w_ref[...],
                    preferred_element_type=jnp.float32) + fc1b_ref[...], 0.0)
        logits = (jnp.dot(hid.astype(jnp.bfloat16), fc2w_ref[...],
                          preferred_element_type=jnp.float32) + fc2b_ref[...])
        o_ref[...] = logits.astype(o_ref.dtype)


def grp_forward(x, lengths,
                w_ih0, w_hh0, b_ih0, b_hh0,
                w_ih1, w_hh1, b_ih1, b_hh1,
                fc1_w, fc1_b, fc2_w, fc2_b,
                *, block_b=128, time_chunk=16):
    """x: (B, T, GRP_SIZE) padded batch-first; lengths: (B,) valid lengths."""
    B, T, I = x.shape
    H = w_hh0.shape[1]
    O = fc2_w.shape[0]
    OP = _round_up(max(O, 128), 128)          # lane-dense padded logits width
    assert w_ih0.shape == (3 * H, I)

    f32 = lambda a: jnp.asarray(a, jnp.float32)
    bf16 = lambda a: jnp.asarray(a, jnp.bfloat16)
    lengths = lengths.astype(jnp.int32)

    # ---- batch tiling: multiple of 8 sublanes, >=2 tiles when B allows so the
    # "parallel" axis shards across both v7x TensorCores ----
    tb = min(block_b, _round_up(B, 8))
    if B > 8 and _round_up(B, tb) // tb < 2:
        tb = max(8, _round_up((B + 1) // 2, 8))
    bp = _round_up(B, tb)
    num_blocks = bp // tb

    # ---- time chunking: decouples batch tile size from sequence length ----
    tc = max(8, min(time_chunk, _round_up(T, 8)))
    tp = _round_up(T, tc)
    num_chunks = tp // tc

    # ---- layer-0 input projection precomputed (time-parallel) in XLA; folded
    # biases b_ih0 + [b_hh0_r, b_hh0_z, 0]; fed lane-dense (tp, bp, 3H) bf16 ----
    gi0_bias = f32(b_ih0) + jnp.concatenate(
        [f32(b_hh0)[:2 * H], jnp.zeros((H,), jnp.float32)])
    xproj = (jnp.dot(x.reshape(B * T, I).astype(jnp.float32), f32(w_ih0).T)
             + gi0_bias).reshape(B, T, 3 * H)
    xproj = jnp.pad(xproj, ((0, bp - B), (0, tp - T), (0, 0)))
    xproj_tm = jnp.transpose(xproj, (1, 0, 2)).astype(jnp.bfloat16)   # (tp,bp,3H)

    len_p = jnp.pad(lengths, (0, bp - B))     # padded rows: length 0 -> frozen h
    len2d = len_p.reshape(bp, 1)
    tile_maxlen = jnp.max(len_p.reshape(num_blocks, tb), axis=1).astype(jnp.int32)

    # ---- weights: pre-transposed, bf16 for MXU; biases f32 row vectors ----
    whh0_t = bf16(w_hh0).T                                   # (H, 3H)
    wih1_t = bf16(w_ih1).T                                   # (H, 3H)
    whh1_t = bf16(w_hh1).T                                   # (H, 3H)
    bhh0n = f32(b_hh0)[2 * H:].reshape(1, H)
    bih1rz = (f32(b_ih1) + jnp.concatenate(
        [f32(b_hh1)[:2 * H], jnp.zeros((H,), jnp.float32)])).reshape(1, 3 * H)
    bhh1n = f32(b_hh1)[2 * H:].reshape(1, H)
    fc1w_t = bf16(fc1_w).T                                   # (2H, 2H)
    fc1b_r = f32(fc1_b).reshape(1, 2 * H)
    fc2w_t = bf16(jnp.pad(f32(fc2_w), ((0, OP - O), (0, 0)))).T   # (2H, OP)
    fc2b_r = jnp.pad(f32(fc2_b), (0, OP - O)).reshape(1, OP)

    weight_arrays = (whh0_t, bhh0n, wih1_t, bih1rz, whh1_t, bhh1n,
                     fc1w_t, fc1b_r, fc2w_t, fc2b_r)
    weight_bytes = sum(int(a.size) * a.dtype.itemsize for a in weight_arrays)

    # ---- generation-aware VMEM limit ----
    try:
        vmem_cap = int(pltpu.get_tpu_info().vmem_capacity_bytes)
    except Exception:
        vmem_cap = 64 * 1024 * 1024
    need = (2 * tc * tb * 3 * H * 2            # double-buffered xproj block (bf16)
            + 2 * tb * OP * 4                  # output block
            + 2 * tb * H * 4                   # h1/h2 scratch
            + tb * 4 + weight_bytes)
    vmem_limit = int(min(vmem_cap * 3 // 4, max(32 * 1024 * 1024, 4 * need)))

    flops = int(bp) * (
        tp * (2 * H * 3 * H                    # layer-0 recurrent matmul
              + 2 * H * 3 * H + 2 * H * 3 * H) # layer-1 input + recurrent matmuls
        + 2 * (2 * H) * (2 * H) + 2 * (2 * H) * OP)
    transcendentals = int(bp) * tp * 6 * H
    bytes_accessed = (int(xproj_tm.size) * 2 + int(len2d.size) * 4
                      + int(tile_maxlen.size) * 4 + int(bp) * OP * 4
                      + weight_bytes)

    const2 = lambda shape: pl.BlockSpec(shape, lambda i, c, ml: (0, 0))

    out = pl.pallas_call(
        grp_kernel,
        out_shape=jax.ShapeDtypeStruct((bp, OP), jnp.float32),
        grid_spec=pltpu.PrefetchScalarGridSpec(
            num_scalar_prefetch=1,
            grid=(num_blocks, num_chunks),
            in_specs=[
                pl.BlockSpec((tb, 1), lambda i, c, ml: (i, 0)),
                pl.BlockSpec((tc, tb, 3 * H), lambda i, c, ml: (c, i, 0)),
                const2((H, 3 * H)), const2((1, H)),
                const2((H, 3 * H)), const2((1, 3 * H)),
                const2((H, 3 * H)), const2((1, H)),
                const2((2 * H, 2 * H)), const2((1, 2 * H)),
                const2((2 * H, OP)), const2((1, OP)),
            ],
            out_specs=pl.BlockSpec((tb, OP), lambda i, c, ml: (i, 0)),
            scratch_shapes=[pltpu.VMEM((tb, H), jnp.float32),
                            pltpu.VMEM((tb, H), jnp.float32)],
        ),
        compiler_params=pltpu.CompilerParams(
            dimension_semantics=("parallel", "arbitrary"),
            vmem_limit_bytes=vmem_limit),
        cost_estimate=pl.CostEstimate(
            flops=int(flops), transcendentals=int(transcendentals),
            bytes_accessed=int(bytes_accessed)),
    )(tile_maxlen, len2d, xproj_tm,
      whh0_t, bhh0n, wih1_t, bih1rz, whh1_t, bhh1n,
      fc1w_t, fc1b_r, fc2w_t, fc2b_r)
    return out[:B, :O]


def grp_ref(x, lengths,
            w_ih0, w_hh0, b_ih0, b_hh0,
            w_ih1, w_hh1, b_ih1, b_hh1,
            fc1_w, fc1_b, fc2_w, fc2_b):
    """Pure-JAX reference mirroring the PyTorch forward (f32, HIGHEST matmuls)."""
    B, T, _ = x.shape
    H = w_hh0.shape[1]
    hp = jax.lax.Precision.HIGHEST
    w_ih = (w_ih0, w_ih1); w_hh = (w_hh0, w_hh1)
    b_ih = (b_ih0, b_ih1); b_hh = (b_hh0, b_hh1)
    h = [jnp.zeros((B, H), jnp.float32), jnp.zeros((B, H), jnp.float32)]
    for t in range(T):
        inp = x[:, t, :]
        valid = (t < lengths)[:, None]
        for layer in range(2):
            gi = jnp.dot(inp, w_ih[layer].T, precision=hp) + b_ih[layer]
            gh = jnp.dot(h[layer], w_hh[layer].T, precision=hp) + b_hh[layer]
            r = jax.nn.sigmoid(gi[:, :H] + gh[:, :H])
            z = jax.nn.sigmoid(gi[:, H:2 * H] + gh[:, H:2 * H])
            n = jnp.tanh(gi[:, 2 * H:] + r * gh[:, 2 * H:])
            h_new = (1.0 - z) * n + z * h[layer]
            h[layer] = jnp.where(valid, h_new, h[layer])
            inp = h[layer]
    state = jnp.concatenate(h, axis=-1)
    hid = jax.nn.relu(jnp.dot(state, fc1_w.T, precision=hp) + fc1_b)
    return jnp.dot(hid, fc2_w.T, precision=hp) + fc2_b


if __name__ == "__main__":
    GRP_SIZE = 16          # stand-in for the mjai GRP_SIZE feature constant
    H = 64                 # hidden_size (module default)
    O = 24                 # output logits (4! rank permutations)
    B, T = 2, 8            # small test: batch of 2 variable-length sequences

    key = jax.random.PRNGKey(0)
    ks = jax.random.split(key, 11)

    def rnd(k, shape, s=0.1):
        return s * jax.random.normal(k, shape, dtype=jnp.float32)

    x = jax.random.normal(ks[0], (B, T, GRP_SIZE), dtype=jnp.float32)
    lengths = jnp.array([T, 5], dtype=jnp.int32)   # second sequence is shorter

    # PyTorch layouts: weight_ih (3H, in), weight_hh (3H, H), biases (3H,)
    w_ih0 = rnd(ks[1], (3 * H, GRP_SIZE)); w_hh0 = rnd(ks[2], (3 * H, H))
    b_ih0 = rnd(ks[3], (3 * H,));          b_hh0 = rnd(ks[4], (3 * H,))
    w_ih1 = rnd(ks[5], (3 * H, H));        w_hh1 = rnd(ks[6], (3 * H, H))
    b_ih1 = rnd(ks[7], (3 * H,));          b_hh1 = rnd(ks[8], (3 * H,))
    fc1_w = rnd(ks[9], (2 * H, 2 * H));    fc1_b = jnp.zeros((2 * H,), jnp.float32)
    fc2_w = rnd(ks[10], (O, 2 * H));       fc2_b = jnp.zeros((O,), jnp.float32)

    out = grp_forward(x, lengths,
                      w_ih0, w_hh0, b_ih0, b_hh0,
                      w_ih1, w_hh1, b_ih1, b_hh1,
                      fc1_w, fc1_b, fc2_w, fc2_b)
    out = jax.block_until_ready(out)

    ref = grp_ref(x, lengths,
                  w_ih0, w_hh0, b_ih0, b_hh0,
                  w_ih1, w_hh1, b_ih1, b_hh1,
                  fc1_w, fc1_b, fc2_w, fc2_b)

    assert out.shape == (B, O)
    # bf16 MXU operands (f32 accumulation) -> slightly looser tolerance vs f32 ref
    assert jnp.allclose(out, ref, atol=2e-2, rtol=2e-2), "mismatch vs reference"
    print("KERNEL_OK")
</pallas_src>

<mosaic_0001>
module attributes {stable_mosaic.version = 11 : i64} {
  func.func @grp_kernel(%arg0: i32, %arg1: i32, %arg2: memref<1xi32, #tpu.memory_space<smem>>, %arg3: memref<8x1xi32, #tpu.memory_space<vmem>>, %arg4: memref<8x8x192xbf16, #tpu.memory_space<vmem>>, %arg5: memref<64x192xbf16, #tpu.memory_space<vmem>>, %arg6: memref<1x64xf32, #tpu.memory_space<vmem>>, %arg7: memref<64x192xbf16, #tpu.memory_space<vmem>>, %arg8: memref<1x192xf32, #tpu.memory_space<vmem>>, %arg9: memref<64x192xbf16, #tpu.memory_space<vmem>>, %arg10: memref<1x64xf32, #tpu.memory_space<vmem>>, %arg11: memref<128x128xbf16, #tpu.memory_space<vmem>>, %arg12: memref<1x128xf32, #tpu.memory_space<vmem>>, %arg13: memref<128x128xbf16, #tpu.memory_space<vmem>>, %arg14: memref<1x128xf32, #tpu.memory_space<vmem>>, %arg15: memref<8x128xf32, #tpu.memory_space<vmem>>, %arg16: memref<8x64xf32, #tpu.memory_space<vmem>>, %arg17: memref<8x64xf32, #tpu.memory_space<vmem>>) attributes {dimension_semantics = [#tpu.dimension_semantics<parallel>, #tpu.dimension_semantics<arbitrary>], iteration_bounds = array<i64: 1, 1>, scalar_prefetch = 1 : i64, scratch_operands = 2 : i64, tpu.core_type = #tpu.core_type<tc>, window_params = [{transform_indices = @transform_0, window_bounds = array<i64: 8, 1>}, {transform_indices = @transform_1, window_bounds = array<i64: 8, 8, 192>}, {pipeline_mode = #tpu.pipeline_mode<synchronous>, transform_indices = @transform_2, window_bounds = array<i64: 64, 192>}, {pipeline_mode = #tpu.pipeline_mode<synchronous>, transform_indices = @transform_3, window_bounds = array<i64: 1, 64>}, {pipeline_mode = #tpu.pipeline_mode<synchronous>, transform_indices = @transform_4, window_bounds = array<i64: 64, 192>}, {pipeline_mode = #tpu.pipeline_mode<synchronous>, transform_indices = @transform_5, window_bounds = array<i64: 1, 192>}, {pipeline_mode = #tpu.pipeline_mode<synchronous>, transform_indices = @transform_6, window_bounds = array<i64: 64, 192>}, {pipeline_mode = #tpu.pipeline_mode<synchronous>, transform_indices = @transform_7, window_bounds = array<i64: 1, 64>}, {pipeline_mode = #tpu.pipeline_mode<synchronous>, transform_indices = @transform_8, window_bounds = array<i64: 128, 128>}, {pipeline_mode = #tpu.pipeline_mode<synchronous>, transform_indices = @transform_9, window_bounds = array<i64: 1, 128>}, {pipeline_mode = #tpu.pipeline_mode<synchronous>, transform_indices = @transform_10, window_bounds = array<i64: 128, 128>}, {pipeline_mode = #tpu.pipeline_mode<synchronous>, transform_indices = @transform_11, window_bounds = array<i64: 1, 128>}, {transform_indices = @transform_12, window_bounds = array<i64: 8, 128>}]} {
    %c8_i32 = arith.constant 8 : i32
    %0 = arith.muli %arg1, %c8_i32 : i32
    %c0_i32 = arith.constant 0 : i32
    %1 = arith.cmpi eq, %arg1, %c0_i32 : i32
    %2 = arith.extui %1 : i1 to i32
    %c0_i32_0 = arith.constant 0 : i32
    %3 = arith.cmpi ne, %2, %c0_i32_0 : i32
    scf.if %3 {
      %cst = arith.constant 0.000000e+00 : f32
      %19 = vector.broadcast %cst : f32 to vector<8x64xf32>
      %c0_17 = arith.constant 0 : index
      %c0_18 = arith.constant 0 : index
      %20 = vector.load %arg16[%c0_17, %c0_18] : memref<8x64xf32, #tpu.memory_space<vmem>>, vector<8x64xf32>
      tpu.vector_store %arg16[%c0_17, %c0_18], %19 {strides = array<i32>} : memref<8x64xf32, #tpu.memory_space<vmem>>, vector<8x64xf32>,
      %cst_19 = arith.constant 0.000000e+00 : f32
      %21 = vector.broadcast %cst_19 : f32 to vector<8x64xf32>
      %c0_20 = arith.constant 0 : index
      %c0_21 = arith.constant 0 : index
      %22 = vector.load %arg17[%c0_20, %c0_21] : memref<8x64xf32, #tpu.memory_space<vmem>>, vector<8x64xf32>
      tpu.vector_store %arg17[%c0_20, %c0_21], %21 {strides = array<i32>} : memref<8x64xf32, #tpu.memory_space<vmem>>, vector<8x64xf32>,
    } else {
    }
    %c0 = arith.constant 0 : index
    %c0_1 = arith.constant 0 : index
    %4 = vector.load %arg3[%c0, %c0_1] : memref<8x1xi32, #tpu.memory_space<vmem>>, vector<8x1xi32>
    %c0_2 = arith.constant 0 : index
    %c0_3 = arith.constant 0 : index
    %5 = vector.load %arg5[%c0_2, %c0_3] : memref<64x192xbf16, #tpu.memory_space<vmem>>, vector<64x192xbf16>
    %c0_4 = arith.constant 0 : index
    %c0_5 = arith.constant 0 : index
    %6 = vector.load %arg7[%c0_4, %c0_5] : memref<64x192xbf16, #tpu.memory_space<vmem>>, vector<64x192xbf16>
    %c0_6 = arith.constant 0 : index
    %c0_7 = arith.constant 0 : index
    %7 = vector.load %arg9[%c0_6, %c0_7] : memref<64x192xbf16, #tpu.memory_space<vmem>>, vector<64x192xbf16>
    %c0_8 = arith.constant 0 : index
    %c0_9 = arith.constant 0 : index
    %8 = vector.load %arg6[%c0_8, %c0_9] : memref<1x64xf32, #tpu.memory_space<vmem>>, vector<1x64xf32>
    %c0_10 = arith.constant 0 : index
    %c0_11 = arith.constant 0 : index
    %9 = vector.load %arg8[%c0_10, %c0_11] : memref<1x192xf32, #tpu.memory_space<vmem>>, vector<1x192xf32>
    %c0_12 = arith.constant 0 : index
    %c0_13 = arith.constant 0 : index
    %10 = vector.load %arg10[%c0_12, %c0_13] : memref<1x64xf32, #tpu.memory_space<vmem>>, vector<1x64xf32>
    %11 = arith.index_cast %arg0 : i32 to index
    %12 = memref.load %arg2[%11] : memref<1xi32, #tpu.memory_space<smem>>
    %13 = arith.cmpi slt, %0, %12 : i32
    %14 = arith.extui %13 : i1 to i32
    %c0_i32_14 = arith.constant 0 : i32
    %15 = arith.cmpi ne, %14, %c0_i32_14 : i32
    scf.if %15 {
      %c0_17 = arith.constant 0 : index
      %c0_18 = arith.constant 0 : index
      %19 = vector.load %arg16[%c0_17, %c0_18] : memref<8x64xf32, #tpu.memory_space<vmem>>, vector<8x64xf32>
      %c0_19 = arith.constant 0 : index
      %c0_20 = arith.constant 0 : index
      %20 = vector.load %arg17[%c0_19, %c0_20] : memref<8x64xf32, #tpu.memory_space<vmem>>, vector<8x64xf32>
      %c0_i32_21 = arith.constant 0 : i32
      %c8_i32_22 = arith.constant 8 : i32
      %21 = arith.addi %c0_i32_21, %c8_i32_22 : i32
      %c1_i32 = arith.constant 1 : i32
      %22:2 = scf.for %arg18 = %c0_i32_21 to %21 step %c1_i32 iter_args(%arg19 = %19, %arg20 = %20) -> (vector<8x64xf32>, vector<8x64xf32>)  : i32 {
        %25 = arith.addi %0, %arg18 : i32
        %26 = vector.broadcast %25 : i32 to vector<8x1xi32>
        %27 = arith.cmpi slt, %26, %4 : vector<8x1xi32>
        %28 = arith.index_cast %arg18 : i32 to index
        %c0_28 = arith.constant 0 : index
        %c0_29 = arith.constant 0 : index
        %29 = vector.load %arg4[%28, %c0_28, %c0_29] : memref<8x8x192xbf16, #tpu.memory_space<vmem>>, vector<1x8x192xbf16>
        %30 = vector.shape_cast %29 : vector<1x8x192xbf16> to vector<8x192xbf16>
        %31 = arith.extf %30 : vector<8x192xbf16> to vector<8x192xf32>
        %32 = arith.truncf %arg19 : vector<8x64xf32> to vector<8x64xbf16>
        %cst = arith.constant dense<0.000000e+00> : vector<8x192xf32>
        %33 = tpu.matmul %32, %5, %cst {dimension_numbers = #tpu.dot_dimension_numbers<[1], [0], [0], [1], [0, 0, 1, 1], [], []>} : vector<8x64xbf16>, vector<64x192xbf16>, vector<8x192xf32> -> vector<8x192xf32>
        %34 = vector.extract_strided_slice %31 {offsets = [0, 0], sizes = [8, 64], strides = [1, 1]} : vector<8x192xf32> to vector<8x64xf32>
        %35 = vector.extract_strided_slice %33 {offsets = [0, 0], sizes = [8, 64], strides = [1, 1]} : vector<8x192xf32> to vector<8x64xf32>
        %36 = arith.addf %34, %35 : vector<8x64xf32>
        %cst_30 = arith.constant 5.000000e-01 : f32
        %37 = vector.broadcast %cst_30 : f32 to vector<8x64xf32>
        %38 = arith.mulf %37, %36 : vector<8x64xf32>
        %39 = math.tanh %38 : vector<8x64xf32>
        %cst_31 = arith.constant 5.000000e-01 : f32
        %40 = vector.broadcast %cst_31 : f32 to vector<8x64xf32>
        %41 = arith.mulf %40, %39 : vector<8x64xf32>
        %cst_32 = arith.constant 5.000000e-01 : f32
        %42 = vector.broadcast %cst_32 : f32 to vector<8x64xf32>
        %43 = arith.addf %41, %42 : vector<8x64xf32>
        %44 = vector.extract_strided_slice %31 {offsets = [0, 64], sizes = [8, 64], strides = [1, 1]} : vector<8x192xf32> to vector<8x64xf32>
        %45 = vector.extract_strided_slice %33 {offsets = [0, 64], sizes = [8, 64], strides = [1, 1]} : vector<8x192xf32> to vector<8x64xf32>
        %46 = arith.addf %44, %45 : vector<8x64xf32>
        %cst_33 = arith.constant 5.000000e-01 : f32
        %47 = vector.broadcast %cst_33 : f32 to vector<8x64xf32>
        %48 = arith.mulf %47, %46 : vector<8x64xf32>
        %49 = math.tanh %48 : vector<8x64xf32>
        %cst_34 = arith.constant 5.000000e-01 : f32
        %50 = vector.broadcast %cst_34 : f32 to vector<8x64xf32>
        %51 = arith.mulf %50, %49 : vector<8x64xf32>
        %cst_35 = arith.constant 5.000000e-01 : f32
        %52 = vector.broadcast %cst_35 : f32 to vector<8x64xf32>
        %53 = arith.addf %51, %52 : vector<8x64xf32>
        %54 = vector.extract_strided_slice %31 {offsets = [0, 128], sizes = [8, 64], strides = [1, 1]} : vector<8x192xf32> to vector<8x64xf32>
        %55 = vector.extract_strided_slice %33 {offsets = [0, 128], sizes = [8, 64], strides = [1, 1]} : vector<8x192xf32> to vector<8x64xf32>
        %56 = vector.broadcast %8 : vector<1x64xf32> to vector<8x64xf32>
        %57 = arith.addf %55, %56 : vector<8x64xf32>
        %58 = arith.mulf %43, %57 : vector<8x64xf32>
        %59 = arith.addf %54, %58 : vector<8x64xf32>
        %60 = math.tanh %59 : vector<8x64xf32>
        %cst_36 = arith.constant 1.000000e+00 : f32
        %61 = vector.broadcast %cst_36 : f32 to vector<8x64xf32>
        %62 = arith.subf %61, %53 : vector<8x64xf32>
        %63 = arith.mulf %62, %60 : vector<8x64xf32>
        %64 = arith.mulf %53, %arg19 : vector<8x64xf32>
        %65 = arith.addf %63, %64 : vector<8x64xf32>
        %66 = vector.shape_cast %27 : vector<8x1xi1> to vector<8x1xi1>
        %67 = vector.broadcast %66 : vector<8x1xi1> to vector<8x64xi1>
        %68 = arith.select %67, %65, %arg19 : vector<8x64xi1>, vector<8x64xf32>
        %69 = arith.truncf %68 : vector<8x64xf32> to vector<8x64xbf16>
        %cst_37 = arith.constant dense<0.000000e+00> : vector<8x192xf32>
        %70 = tpu.matmul %69, %6, %cst_37 {dimension_numbers = #tpu.dot_dimension_numbers<[1], [0], [0], [1], [0, 0, 1, 1], [], []>} : vector<8x64xbf16>, vector<64x192xbf16>, vector<8x192xf32> -> vector<8x192xf32>
        %71 = vector.broadcast %9 : vector<1x192xf32> to vector<8x192xf32>
        %72 = arith.addf %70, %71 : vector<8x192xf32>
        %73 = arith.truncf %arg20 : vector<8x64xf32> to vector<8x64xbf16>
        %cst_38 = arith.constant dense<0.000000e+00> : vector<8x192xf32>
        %74 = tpu.matmul %73, %7, %cst_38 {dimension_numbers = #tpu.dot_dimension_numbers<[1], [0], [0], [1], [0, 0, 1, 1], [], []>} : vector<8x64xbf16>, vector<64x192xbf16>, vector<8x192xf32> -> vector<8x192xf32>
        %75 = vector.extract_strided_slice %72 {offsets = [0, 0], sizes = [8, 64], strides = [1, 1]} : vector<8x192xf32> to vector<8x64xf32>
        %76 = vector.extract_strided_slice %74 {offsets = [0, 0], sizes = [8, 64], strides = [1, 1]} : vector<8x192xf32> to vector<8x64xf32>
        %77 = arith.addf %75, %76 : vector<8x64xf32>
        %cst_39 = arith.constant 5.000000e-01 : f32
        %78 = vector.broadcast %cst_39 : f32 to vector<8x64xf32>
        %79 = arith.mulf %78, %77 : vector<8x64xf32>
        %80 = math.tanh %79 : vector<8x64xf32>
        %cst_40 = arith.constant 5.000000e-01 : f32
        %81 = vector.broadcast %cst_40 : f32 to vector<8x64xf32>
        %82 = arith.mulf %81, %80 : vector<8x64xf32>
        %cst_41 = arith.constant 5.000000e-01 : f32
        %83 = vector.broadcast %cst_41 : f32 to vector<8x64xf32>
        %84 = arith.addf %82, %83 : vector<8x64xf32>
        %85 = vector.extract_strided_slice %72 {offsets = [0, 64], sizes = [8, 64], strides = [1, 1]} : vector<8x192xf32> to vector<8x64xf32>
        %86 = vector.extract_strided_slice %74 {offsets = [0, 64], sizes = [8, 64], strides = [1, 1]} : vector<8x192xf32> to vector<8x64xf32>
        %87 = arith.addf %85, %86 : vector<8x64xf32>
        %cst_42 = arith.constant 5.000000e-01 : f32
        %88 = vector.broadcast %cst_42 : f32 to vector<8x64xf32>
        %89 = arith.mulf %88, %87 : vector<8x64xf32>
        %90 = math.tanh %89 : vector<8x64xf32>
        %cst_43 = arith.constant 5.000000e-01 : f32
        %91 = vector.broadcast %cst_43 : f32 to vector<8x64xf32>
        %92 = arith.mulf %91, %90 : vector<8x64xf32>
        %cst_44 = arith.constant 5.000000e-01 : f32
        %93 = vector.broadcast %cst_44 : f32 to vector<8x64xf32>
        %94 = arith.addf %92, %93 : vector<8x64xf32>
        %95 = vector.extract_strided_slice %72 {offsets = [0, 128], sizes = [8, 64], strides = [1, 1]} : vector<8x192xf32> to vector<8x64xf32>
        %96 = vector.extract_strided_slice %74 {offsets = [0, 128], sizes = [8, 64], strides = [1, 1]} : vector<8x192xf32> to vector<8x64xf32>
        %97 = vector.broadcast %10 : vector<1x64xf32> to vector<8x64xf32>
        %98 = arith.addf %96, %97 : vector<8x64xf32>
        %99 = arith.mulf %84, %98 : vector<8x64xf32>
        %100 = arith.addf %95, %99 : vector<8x64xf32>
        %101 = math.tanh %100 : vector<8x64xf32>
        %cst_45 = arith.constant 1.000000e+00 : f32
        %102 = vector.broadcast %cst_45 : f32 to vector<8x64xf32>
        %103 = arith.subf %102, %94 : vector<8x64xf32>
        %104 = arith.mulf %103, %101 : vector<8x64xf32>
        %105 = arith.mulf %94, %arg20 : vector<8x64xf32>
        %106 = arith.addf %104, %105 : vector<8x64xf32>
        %107 = vector.shape_cast %27 : vector<8x1xi1> to vector<8x1xi1>
        %108 = vector.broadcast %107 : vector<8x1xi1> to vector<8x64xi1>
        %109 = arith.select %108, %106, %arg20 : vector<8x64xi1>, vector<8x64xf32>
        scf.yield %68, %109 : vector<8x64xf32>, vector<8x64xf32>
      }
      %c8_i32_23 = arith.constant 8 : i32
      %c0_24 = arith.constant 0 : index
      %c0_25 = arith.constant 0 : index
      %23 = vector.load %arg16[%c0_24, %c0_25] : memref<8x64xf32, #tpu.memory_space<vmem>>, vector<8x64xf32>
      tpu.vector_store %arg16[%c0_24, %c0_25], %22#0 {strides = array<i32>} : memref<8x64xf32, #tpu.memory_space<vmem>>, vector<8x64xf32>,
      %c0_26 = arith.constant 0 : index
      %c0_27 = arith.constant 0 : index
      %24 = vector.load %arg17[%c0_26, %c0_27] : memref<8x64xf32, #tpu.memory_space<vmem>>, vector<8x64xf32>
      tpu.vector_store %arg17[%c0_26, %c0_27], %22#1 {strides = array<i32>} : memref<8x64xf32, #tpu.memory_space<vmem>>, vector<8x64xf32>,
    } else {
    }
    %c0_i32_15 = arith.constant 0 : i32
    %16 = arith.cmpi eq, %arg1, %c0_i32_15 : i32
    %17 = arith.extui %16 : i1 to i32
    %c0_i32_16 = arith.constant 0 : i32
    %18 = arith.cmpi ne, %17, %c0_i32_16 : i32
    scf.if %18 {
      %c0_17 = arith.constant 0 : index
      %c0_18 = arith.constant 0 : index
      %19 = vector.load %arg16[%c0_17, %c0_18] : memref<8x64xf32, #tpu.memory_space<vmem>>, vector<8x64xf32>
      %c0_19 = arith.constant 0 : index
      %c0_20 = arith.constant 0 : index
      %20 = vector.load %arg17[%c0_19, %c0_20] : memref<8x64xf32, #tpu.memory_space<vmem>>, vector<8x64xf32>
      %21 = tpu.concatenate %19, %20 in 1 : vector<8x64xf32>, vector<8x64xf32> -> vector<8x128xf32>
      %22 = arith.truncf %21 : vector<8x128xf32> to vector<8x128xbf16>
      %c0_21 = arith.constant 0 : index
      %c0_22 = arith.constant 0 : index
      %23 = vector.load %arg11[%c0_21, %c0_22] : memref<128x128xbf16, #tpu.memory_space<vmem>>, vector<128x128xbf16>
      %cst = arith.constant dense<0.000000e+00> : vector<8x128xf32>
      %24 = tpu.matmul %22, %23, %cst {dimension_numbers = #tpu.dot_dimension_numbers<[1], [0], [0], [1], [0, 0, 1, 1], [], []>} : vector<8x128xbf16>, vector<128x128xbf16>, vector<8x128xf32> -> vector<8x128xf32>
      %c0_23 = arith.constant 0 : index
      %c0_24 = arith.constant 0 : index
      %25 = vector.load %arg12[%c0_23, %c0_24] : memref<1x128xf32, #tpu.memory_space<vmem>>, vector<1x128xf32>
      %26 = vector.broadcast %25 : vector<1x128xf32> to vector<8x128xf32>
      %27 = arith.addf %24, %26 : vector<8x128xf32>
      %cst_25 = arith.constant 0.000000e+00 : f32
      %28 = vector.broadcast %cst_25 : f32 to vector<8x128xf32>
      %29 = arith.maximumf %27, %28 : vector<8x128xf32>
      %30 = arith.truncf %29 : vector<8x128xf32> to vector<8x128xbf16>
      %c0_26 = arith.constant 0 : index
      %c0_27 = arith.constant 0 : index
      %31 = vector.load %arg13[%c0_26, %c0_27] : memref<128x128xbf16, #tpu.memory_space<vmem>>, vector<128x128xbf16>
      %cst_28 = arith.constant dense<0.000000e+00> : vector<8x128xf32>
      %32 = tpu.matmul %30, %31, %cst_28 {dimension_numbers = #tpu.dot_dimension_numbers<[1], [0], [0], [1], [0, 0, 1, 1], [], []>} : vector<8x128xbf16>, vector<128x128xbf16>, vector<8x128xf32> -> vector<8x128xf32>
      %c0_29 = arith.constant 0 : index
      %c0_30 = arith.constant 0 : index
      %33 = vector.load %arg14[%c0_29, %c0_30] : memref<1x128xf32, #tpu.memory_space<vmem>>, vector<1x128xf32>
      %34 = vector.broadcast %33 : vector<1x128xf32> to vector<8x128xf32>
      %35 = arith.addf %32, %34 : vector<8x128xf32>
      %c0_31 = arith.constant 0 : index
      %c0_32 = arith.constant 0 : index
      %36 = vector.load %arg15[%c0_31, %c0_32] : memref<8x128xf32, #tpu.memory_space<vmem>>, vector<8x128xf32>
      tpu.vector_store %arg15[%c0_31, %c0_32], %35 {strides = array<i32>} : memref<8x128xf32, #tpu.memory_space<vmem>>, vector<8x128xf32>,
    } else {
    }
    return
  }
  func.func @transform_0(%arg0: i32, %arg1: i32, %arg2: memref<1xi32, #tpu.memory_space<smem>>) -> (i32, i32) {
    %c0_i32 = arith.constant 0 : i32
    %c0_i32_0 = arith.constant 0 : i32
    return %arg0, %c0_i32 : i32, i32
  }
  func.func @transform_1(%arg0: i32, %arg1: i32, %arg2: memref<1xi32, #tpu.memory_space<smem>>) -> (i32, i32, i32) {
    %c0_i32 = arith.constant 0 : i32
    %c0_i32_0 = arith.constant 0 : i32
    return %arg1, %arg0, %c0_i32 : i32, i32, i32
  }
  func.func @transform_2(%arg0: i32, %arg1: i32, %arg2: memref<1xi32, #tpu.memory_space<smem>>) -> (i32, i32) {
    %c0_i32 = arith.constant 0 : i32
    %c0_i32_0 = arith.constant 0 : i32
    %c0_i32_1 = arith.constant 0 : i32
    return %c0_i32, %c0_i32_0 : i32, i32
  }
  func.func @transform_3(%arg0: i32, %arg1: i32, %arg2: memref<1xi32, #tpu.memory_space<smem>>) -> (i32, i32) {
    %c0_i32 = arith.constant 0 : i32
    %c0_i32_0 = arith.constant 0 : i32
    %c0_i32_1 = arith.constant 0 : i32
    return %c0_i32, %c0_i32_0 : i32, i32
  }
  func.func @transform_4(%arg0: i32, %arg1: i32, %arg2: memref<1xi32, #tpu.memory_space<smem>>) -> (i32, i32) {
    %c0_i32 = arith.constant 0 : i32
    %c0_i32_0 = arith.constant 0 : i32
    %c0_i32_1 = arith.constant 0 : i32
    return %c0_i32, %c0_i32_0 : i32, i32
  }
  func.func @transform_5(%arg0: i32, %arg1: i32, %arg2: memref<1xi32, #tpu.memory_space<smem>>) -> (i32, i32) {
    %c0_i32 = arith.constant 0 : i32
    %c0_i32_0 = arith.constant 0 : i32
    %c0_i32_1 = arith.constant 0 : i32
    return %c0_i32, %c0_i32_0 : i32, i32
  }
  func.func @transform_6(%arg0: i32, %arg1: i32, %arg2: memref<1xi32, #tpu.memory_space<smem>>) -> (i32, i32) {
    %c0_i32 = arith.constant 0 : i32
    %c0_i32_0 = arith.constant 0 : i32
    %c0_i32_1 = arith.constant 0 : i32
    return %c0_i32, %c0_i32_0 : i32, i32
  }
  func.func @transform_7(%arg0: i32, %arg1: i32, %arg2: memref<1xi32, #tpu.memory_space<smem>>) -> (i32, i32) {
    %c0_i32 = arith.constant 0 : i32
    %c0_i32_0 = arith.constant 0 : i32
    %c0_i32_1 = arith.constant 0 : i32
    return %c0_i32, %c0_i32_0 : i32, i32
  }
  func.func @transform_8(%arg0: i32, %arg1: i32, %arg2: memref<1xi32, #tpu.memory_space<smem>>) -> (i32, i32) {
    %c0_i32 = arith.constant 0 : i32
    %c0_i32_0 = arith.constant 0 : i32
    %c0_i32_1 = arith.constant 0 : i32
    return %c0_i32, %c0_i32_0 : i32, i32
  }
  func.func @transform_9(%arg0: i32, %arg1: i32, %arg2: memref<1xi32, #tpu.memory_space<smem>>) -> (i32, i32) {
    %c0_i32 = arith.constant 0 : i32
    %c0_i32_0 = arith.constant 0 : i32
    %c0_i32_1 = arith.constant 0 : i32
    return %c0_i32, %c0_i32_0 : i32, i32
  }
  func.func @transform_10(%arg0: i32, %arg1: i32, %arg2: memref<1xi32, #tpu.memory_space<smem>>) -> (i32, i32) {
    %c0_i32 = arith.constant 0 : i32
    %c0_i32_0 = arith.constant 0 : i32
    %c0_i32_1 = arith.constant 0 : i32
    return %c0_i32, %c0_i32_0 : i32, i32
  }
  func.func @transform_11(%arg0: i32, %arg1: i32, %arg2: memref<1xi32, #tpu.memory_space<smem>>) -> (i32, i32) {
    %c0_i32 = arith.constant 0 : i32
    %c0_i32_0 = arith.constant 0 : i32
    %c0_i32_1 = arith.constant 0 : i32
    return %c0_i32, %c0_i32_0 : i32, i32
  }
  func.func @transform_12(%arg0: i32, %arg1: i32, %arg2: memref<1xi32, #tpu.memory_space<smem>>) -> (i32, i32) {
    %c0_i32 = arith.constant 0 : i32
    %c0_i32_0 = arith.constant 0 : i32
    return %arg0, %c0_i32 : i32, i32
  }
}

</mosaic_0001>

<bundles_post_ra>
// kernel: tpu_custom_call.1
= control target key start
LH: loop header
LB: loop body
LE: loop exit
PB: predicated region body
PF: predicated region fallthrough
CT: control target
= control target key end

     0   :  { %19 = vsyncpa [#allocation7], 0  ;;  %s1551_s0 = inlined_call_operand.<no memory space> [shape: s32[1], index: 0, kind: input, shape index: {}]   ;;  %s1552_s1 = inlined_call_operand.vmem [shape: s32[8,1], index: 1, kind: input, shape index: {}]   ;;  %s1553_s2 = inlined_call_operand.hbm [shape: bf16[8,8,192], index: 2, kind: input, shape index: {}]   ;;  %s1554_s3 = inlined_call_operand.hbm [shape: bf16[64,192], index: 3, kind: input, shape index: {}]   ;;  %s1555_s4 = inlined_call_operand.vmem [shape: f32[1,64], index: 4, kind: input, shape index: {}]   ;;  %s1556_s5 = inlined_call_operand.hbm [shape: bf16[64,192], index: 5, kind: input, shape index: {}]   ;;  %s1557_s6 = inlined_call_operand.vmem [shape: f32[1,192], index: 6, kind: input, shape index: {}]   ;;  %s1558_s7 = inlined_call_operand.hbm [shape: bf16[64,192], index: 7, kind: input, shape index: {}]   ;;  %s1559_s8 = inlined_call_operand.vmem [shape: f32[1,64], index: 8, kind: input, shape index: {}]   ;;  %s1560_s9 = inlined_call_operand.hbm [shape: bf16[128,128], index: 9, kind: input, shape index: {}]   ;;  %s1561_s10 = inlined_call_operand.vmem [shape: f32[1,128], index: 10, kind: input, shape index: {}]   ;;  %s1562_s11 = inlined_call_operand.hbm [shape: bf16[128,128], index: 11, kind: input, shape index: {}]   ;;  %s1563_s12 = inlined_call_operand.vmem [shape: f32[1,128], index: 12, kind: input, shape index: {}]   ;;  %s1564_s13 = inlined_call_operand.hbm [shape: f32[8,128], index: 13, kind: output, shape index: {}]  }
   0x1   :  { %20 = vsyncpa [#allocation10], 0 }
   0x2   :  { %21 = vsyncpa [#allocation13], 0 }
   0x3   :  { %22 = vsyncpa [#allocation16], 0 }
   0x4   :  { %23 = vsyncpa [#allocation8], 0  ;;  %s1159_s25 = smov [#allocation9]   ;;  %s1160_s27 = smov [#allocation12]  }
   0x5   :  { %s43_s26 = sshll.u32 %s1159_s25, 4  ;;  %s71_s28 = sshll.u32 %s1160_s27, 4  ;;  %s44_s26 = int_to_ptr.vmem [resolvable:$true] %s43_s26  ;;  %s1244_s28 = int_to_ptr.vmem [resolvable:$true] %s71_s28 }
   0x6   :  { %s971_s14 = scalar_lea.hbm %s1554_s3, 1024 }
   0x7   :  { %p972_p0 = scmp.ne.s32.totalorder %s1554_s3, %s971_s14  ;;  %p975_p1 = scmp.lt.u32.totalorder %s971_s14, %s1554_s3 }
   0x9   :  { %p977_p2 = pnand %p975_p1, %p972_p0 }
   0xb   :  { %980 = shalt.err (!%p977_p2)
}
   0xc   :  { %s981_s19 = scalar_lea.vmem %s44_s26, 1024  ;;  %p986_p4 = scmp.lt.s32.totalorder %s44_s26, %s44_s26 }
   0xd   :  { %p982_p3 = scmp.ne.s32.totalorder %s44_s26, %s981_s19  ;;  %p987_p5 = scmp.lt.s32.totalorder %s981_s19, %s981_s19 }
   0xf   :  { %p988_p6 = por %p987_p5, %p986_p4 }
  0x11   :  { %p989_p7 = pnand %p988_p6, %p982_p3 }
  0x13   :  { %992 = shalt.err (!%p989_p7)
}
  0x14   :  { %s1161_s20 = smov 128   ;;  %s1162_s21 = smov 8  }
  0x15   :  { %49 = dma.hbm_to_vmem [thread:$0]  %s1554_s3, 1024, %s44_s26, [#allocation10], %s1161_s20, %s1161_s20, %s1162_s21  }
  0x16   :  { %s993_s27 = scalar_lea.hbm %s1558_s7, 1024 }
  0x17   :  { %p994_p8 = scmp.ne.s32.totalorder %s1558_s7, %s993_s27  ;;  %p997_p9 = scmp.lt.u32.totalorder %s993_s27, %s1558_s7 }
  0x19   :  { %p999_p10 = pnand %p997_p9, %p994_p8 }
  0x1b   :  { %1002 = shalt.err (!%p999_p10)
}
  0x1c   :  { %s1003_s16 = scalar_lea.vmem %s1244_s28, 1024  ;;  %p1008_p12 = scmp.lt.s32.totalorder %s1244_s28, %s1244_s28 }
  0x1d   :  { %p1004_p11 = scmp.ne.s32.totalorder %s1244_s28, %s1003_s16  ;;  %p1009_p13 = scmp.lt.s32.totalorder %s1003_s16, %s1003_s16 }
  0x1f   :  { %p1010_p0 = por %p1009_p13, %p1008_p12 }
  0x21   :  { %p1011_p1 = pnand %p1010_p0, %p1004_p11 }
  0x23   :  { %1014 = shalt.err (!%p1011_p1)
}
  0x24   :  { %77 = dma.hbm_to_vmem [thread:$0]  %s1558_s7, 1024, %s1244_s28, [#allocation13], %s1161_s20, %s1161_s20, %s1162_s21  }
  0x25   :  { %s1163_s17 = smov [#allocation6]   ;;  %s1164_s19 = smov [#allocation11]  }
  0x26   :  { %s31_s18 = sshll.u32 %s1163_s17, 4  ;;  %s57_s22 = sshll.u32 %s1164_s19, 4  ;;  %s32_s18 = int_to_ptr.vmem [resolvable:$true] %s31_s18  ;;  %s1281_s22 = int_to_ptr.vmem [resolvable:$true] %s57_s22 }
  0x27   :  { %s1015_s25 = scalar_lea.hbm %s1553_s2, 1024 }
  0x28   :  { %p1016_p2 = scmp.ne.s32.totalorder %s1553_s2, %s1015_s25  ;;  %p1019_p3 = scmp.lt.u32.totalorder %s1015_s25, %s1553_s2 }
  0x2a   :  { %p1021_p4 = pnand %p1019_p3, %p1016_p2 }
  0x2c   :  { %1024 = shalt.err (!%p1021_p4)
}
  0x2d   :  { %s1025_s7 = scalar_lea.vmem %s32_s18, 1024  ;;  %p1030_p6 = scmp.lt.s32.totalorder %s32_s18, %s32_s18 }
  0x2e   :  { %p1026_p5 = scmp.ne.s32.totalorder %s32_s18, %s1025_s7  ;;  %p1031_p7 = scmp.lt.s32.totalorder %s1025_s7, %s1025_s7 }
  0x30   :  { %p1032_p8 = por %p1031_p7, %p1030_p6 }
  0x32   :  { %p1033_p9 = pnand %p1032_p8, %p1026_p5 }
  0x34   :  { %1036 = shalt.err (!%p1033_p9)
}
  0x35   :  { %37 = dma.hbm_to_vmem [thread:$0]  %s1553_s2, 1024, %s32_s18, [#allocation7], %s1161_s20, %s1161_s20, %s1162_s21  }
  0x36   :  { %s1037_s26 = scalar_lea.hbm %s1556_s5, 1024 }
  0x37   :  { %p1038_p10 = scmp.ne.s32.totalorder %s1556_s5, %s1037_s26  ;;  %p1041_p11 = scmp.lt.u32.totalorder %s1037_s26, %s1556_s5 }
  0x39   :  { %p1043_p12 = pnand %p1041_p11, %p1038_p10 }
  0x3b   :  { %1046 = shalt.err (!%p1043_p12)
}
  0x3c   :  { %s1047_s25 = scalar_lea.vmem %s1281_s22, 1024  ;;  %p1052_p0 = scmp.lt.s32.totalorder %s1281_s22, %s1281_s22 }
  0x3d   :  { %p1048_p13 = scmp.ne.s32.totalorder %s1281_s22, %s1047_s25  ;;  %p1053_p1 = scmp.lt.s32.totalorder %s1047_s25, %s1047_s25 }
  0x3f   :  { %p1054_p2 = por %p1053_p1, %p1052_p0 }
  0x41   :  { %p1055_p3 = pnand %p1054_p2, %p1048_p13 }
  0x43   :  { %1058 = shalt.err (!%p1055_p3)
}
  0x44   :  { %63 = dma.hbm_to_vmem [thread:$0]  %s1556_s5, 1024, %s1281_s22, [#allocation10], %s1161_s20, %s1161_s20, %s1162_s21  }
  0x45   :  { %s1165_s27 = smov [#allocation14]   ;;  %s1059_s7 = scalar_lea.hbm %s1560_s9, 1024 }
  0x46   :  { %s85_s29 = sshll.u32 %s1165_s27, 4  ;;  %p1060_p4 = scmp.ne.s32.totalorder %s1560_s9, %s1059_s7  ;;  %s86_s29 = int_to_ptr.vmem [resolvable:$true] %s85_s29 }
  0x47   :  { %p1063_p5 = scmp.lt.u32.totalorder %s1059_s7, %s1560_s9 }
  0x49   :  { %p1065_p6 = pnand %p1063_p5, %p1060_p4 }
  0x4b   :  { %1068 = shalt.err (!%p1065_p6)
}
  0x4c   :  { %s1069_s26 = scalar_lea.vmem %s86_s29, 1024  ;;  %p1074_p8 = scmp.lt.s32.totalorder %s86_s29, %s86_s29 }
  0x4d   :  { %p1070_p7 = scmp.ne.s32.totalorder %s86_s29, %s1069_s26  ;;  %p1075_p9 = scmp.lt.s32.totalorder %s1069_s26, %s1069_s26 }
  0x4f   :  { %p1076_p10 = por %p1075_p9, %p1074_p8 }
  0x51   :  { %p1077_p11 = pnand %p1076_p10, %p1070_p7 }
  0x53   :  { %1080 = shalt.err (!%p1077_p11)
}
  0x54   :  { %s1166_s5 = smov 64   ;;  %s1167_s20 = smov 4  }
  0x55   :  { %91 = dma.hbm_to_vmem [thread:$0]  %s1560_s9, 1024, %s86_s29, [#allocation13], %s1166_s5, %s1166_s5, %s1167_s20  }
  0x56   :  { %s1168_s17 = smov [#allocation15]   ;;  %s1081_s25 = scalar_lea.hbm %s1562_s11, 1024 }
  0x57   :  { %s99_s19 = sshll.u32 %s1168_s17, 4  ;;  %p1082_p12 = scmp.ne.s32.totalorder %s1562_s11, %s1081_s25  ;;  %s100_s19 = int_to_ptr.vmem [resolvable:$true] %s99_s19 }
  0x58   :  { %p1085_p13 = scmp.lt.u32.totalorder %s1081_s25, %s1562_s11 }
  0x5a   :  { %p1087_p0 = pnand %p1085_p13, %p1082_p12 }
  0x5c   :  { %1090 = shalt.err (!%p1087_p0)
}
  0x5d   :  { %s1091_s14 = scalar_lea.vmem %s100_s19, 1024  ;;  %p1096_p2 = scmp.lt.s32.totalorder %s100_s19, %s100_s19 }
  0x5e   :  { %p1092_p1 = scmp.ne.s32.totalorder %s100_s19, %s1091_s14  ;;  %p1097_p3 = scmp.lt.s32.totalorder %s1091_s14, %s1091_s14 }
  0x60   :  { %p1098_p4 = por %p1097_p3, %p1096_p2 }
  0x62   :  { %p1099_p5 = pnand %p1098_p4, %p1092_p1 }
  0x64   :  { %1102 = shalt.err (!%p1099_p5)
}
  0x65   :  { %105 = dma.hbm_to_vmem [thread:$0]  %s1562_s11, 1024, %s100_s19, [#allocation16], %s1166_s5, %s1166_s5, %s1167_s20  }
  0x66   :  { %1137 = dma.done.wait [#allocation7], 1024  }
  0x67   :  { %1138 = vsyncadd [#allocation7], 4294966272 }
  0x68   :  { %1139 = dma.done.wait [#allocation10], 2048  }
  0x69   :  { %1140 = vsyncadd [#allocation10], 4294965248 }
  0x6a   :  { %1141 = dma.done.wait [#allocation13], 2048  }
  0x6b   :  { %1142 = vsyncadd [#allocation13], 4294965248 }
  0x6c   :  { %1143 = dma.done.wait [#allocation16], 1024  }
  0x6d   :  { %1144 = vsyncadd [#allocation16], 4294966272  ;;  %vm132_vm0 = vcmask 523264   ;;  %v1169_v0 = vmov 0.0   ;;  %v1353_v1 = vld [vmem:[%s1552_s1] sm:$0xff]  ;;  %v1355_v2 = vld [vmem:[#allocation9] sm:$0xff] }
  0x6e   :  { %133 = vst.msk [vmem:[#allocation2] sm:$0xff] %vm132_vm0, %v1169_v0  ;;  %134 = vst.msk [vmem:[#allocation3] sm:$0xff] %vm132_vm0, %v1169_v0  ;;  %v1357_v3 = vld [vmem:[#allocation9 + $0x8] sm:$0xff]  ;;  %v1359_v4 = vld [vmem:[#allocation9 + $0x10] sm:$0xff]  ;;  %p798_p6 = scmp.le.s32.totalorder %s1551_s0, 0 }
  0x6f   :  { %v1361_v5 = vld [vmem:[#allocation9 + $0x18] sm:$0xff]  ;;  %v1363_v6 = vld [vmem:[#allocation9 + $0x20] sm:$0xff]  ;;  %v1365_v7 = vld [vmem:[#allocation9 + $0x28] sm:$0xff] }
  0x70   :  { %v1367_v8 = vld [vmem:[#allocation9 + $0x30] sm:$0xff]  ;;  %v1369_v9 = vld [vmem:[#allocation9 + $0x38] sm:$0xff]  ;;  %v1371_v10 = vld [vmem:[#allocation11] sm:$0xff] }
  0x71   :  { %v1373_v11 = vld [vmem:[#allocation11 + $0x8] sm:$0xff]  ;;  %v1375_v12 = vld [vmem:[#allocation11 + $0x10] sm:$0xff]  ;;  %v1377_v13 = vld [vmem:[#allocation11 + $0x18] sm:$0xff] }
  0x72   :  { %v1379_v14 = vld [vmem:[#allocation11 + $0x20] sm:$0xff]  ;;  %v1381_v15 = vld [vmem:[#allocation11 + $0x28] sm:$0xff]  ;;  %v1383_v16 = vld [vmem:[#allocation11 + $0x30] sm:$0xff]  ;;  %167 = sbr.rel (%p798_p6) target bundleno = 1107 (0x453), region = 81 }
  0x73   :  { %v1385_v17 = vld [vmem:[#allocation11 + $0x38] sm:$0xff]  ;;  %v1387_v18 = vld [vmem:[#allocation12] sm:$0xff]  ;;  %v1389_v19 = vld [vmem:[#allocation12 + $0x8] sm:$0xff] }
  0x74   :  { %v1391_v20 = vld [vmem:[#allocation12 + $0x10] sm:$0xff]  ;;  %v1393_v21 = vld [vmem:[#allocation12 + $0x18] sm:$0xff]  ;;  %v1395_v22 = vld [vmem:[#allocation12 + $0x20] sm:$0xff] }
  0x75   :  { %v1397_v23 = vld [vmem:[#allocation12 + $0x28] sm:$0xff]  ;;  %v1399_v24 = vld [vmem:[#allocation12 + $0x30] sm:$0xff]  ;;  %v1401_v25 = vld [vmem:[#allocation12 + $0x38] sm:$0xff] }
  0x76   :  { %v1406_v26 = vld [vmem:[%s1555_s4] ss:$0 sm:$0xff]  ;;  %v169_v30 = vld [vmem:[#allocation3] sm:$0xff] (!%p798_p6)   ;;  %s1425_s4 = smov (!%p798_p6), 0  }
  0x77   :  { %v1411_v27 = vld [vmem:[%s1557_s6] sm:$0x3] }
  0x78   :  { %v1416_v28 = vld [vmem:[%s1559_s8] ss:$0 sm:$0xff] }
  0x79   :  { %v168_v29 = vld [vmem:[#allocation2] sm:$0xff]  }
  0x7a LB: > { %v802_v31 = vcombine.high %v1355_v2, %v1357_v3  ;;  %v801_v32 = vcombine.low %v1355_v2, %v1357_v3  ;;  %v804_v33 = vcombine.high %v1359_v4, %v1361_v5  ;;  %v803_v34 = vcombine.low %v1359_v4, %v1361_v5  ;;  %s1171_s0 = smov 64   ;;  %s848_s6 = sshll.u32 %s1157_s4, 3  ;;  %s1157_s4 = sphi %s1425_s4, %s175_s4   ;;  %v1153_v29 = vphi %v168_v29, %v1566_v29   ;;  %v1149_v30 = vphi %v169_v30, %v1565_v30  }
  0x7b   : > { %v1170_v35 = vmov 0   ;;  %v806_v36 = vcombine.high %v1363_v6, %v1365_v7  ;;  %295 = vrot.lane.b32.xlu1 %v1153_v29, %s1171_s0  ;;  %v805_v37 = vcombine.low %v1363_v6, %v1365_v7  ;;  %v808_v38 = vcombine.high %v1367_v8, %v1369_v9  ;;  %s183_s8 = scalar_lea.vmem [#allocation6], %s848_s6 }
  0x7c   : > { %232 = vmatprep.subr.bf16.mxu0 %v802_v31  ;;  %264 = vmatprep.mubr.bf16.mxu0 %v1170_v35  ;;  %v807_v39 = vcombine.low %v1367_v8, %v1369_v9  ;;  %v187_v40 = vpack.c.bf16 %v1153_v29, %v1153_v29  ;;  %v179_v41 = vstv %s1157_s4  ;;  %v184_v43 = vld [vmem:[%s183_s8] sm:$0xff]  ;;  %v821_v58 = vcombine.high %v1387_v18, %v1389_v19  ;;  %s175_s4 = sadd.s32 1, %s1157_s4  }
  0x7d   : > { %233 = vmatpush1.bf16.msra.mxu0 %v801_v32  ;;  %946 = vset.pattern.permute.xlu0 %v1170_v35  ;;  %vm180_vm1 = vcmp.lt.s32.totalorder %v179_v41, %v1353_v1  ;;  %v185_v44 = vunpack.c.l.bf16 %v184_v43  ;;  %v186_v53 = vunpack.c.h.bf16 %v184_v43  ;;  %v812_v59 = vcombine.high %v1371_v10, %v1373_v11  ;;  %p172_p7 = scmp.ge.s32.totalorder %s175_s4, 8  }
  0x7e   : > { %234 = vmatprep.subr.bf16.mxu0 %v804_v33  ;;  %396 = vmatprep.mubr.bf16.mxu1 %v1170_v35  ;;  %v300_v42 = vsel %vm180_vm1, 1, %v1170_v35  ;;  %v820_v60 = vcombine.low %v1387_v18, %v1389_v19  ;;  %v811_v61 = vcombine.low %v1371_v10, %v1373_v11  ;;  %v823_v62 = vcombine.high %v1391_v20, %v1393_v21 }
  0x7f   : > { %302 = vperm.xlu0 %946, %v300_v42   ;;  %v814_v63 = vcombine.high %v1375_v12, %v1377_v13  ;;  %364 = vmatprep.subr.bf16.mxu1 %v812_v59  ;;  %v822_v29 = vcombine.low %v1391_v20, %v1393_v21  ;;  %v813_v31 = vcombine.low %v1375_v12, %v1377_v13 }
  0x80   : > { %365 = vmatpush1.bf16.msra.mxu1 %v811_v61  ;;  %v825_v32 = vcombine.high %v1395_v22, %v1397_v23  ;;  %v816_v33 = vcombine.high %v1379_v14, %v1381_v15  ;;  %v405_v41 = vpack.c.bf16 %v1149_v30, %v1149_v30 }
  0x81   : > { %235 = vmatpush1.bf16.msra.mxu0 %v803_v34  ;;  %366 = vmatprep.subr.bf16.mxu1 %v814_v63 }
  0x82   : > { %236 = vmatprep.subr.bf16.mxu0 %v806_v36  ;;  %v815_v36 = vcombine.low %v1379_v14, %v1381_v15 }
  0x84   : > { %367 = vmatpush1.bf16.msra.mxu1 %v813_v31 }
  0x85   : > { %237 = vmatpush1.bf16.msra.mxu0 %v805_v37  ;;  %368 = vmatprep.subr.bf16.mxu1 %v816_v33  ;;  %v827_v37 = vcombine.high %v1399_v24, %v1401_v25 }
  0x86   : > { %238 = vmatprep.subr.bf16.mxu0 %v808_v38  ;;  %v818_v38 = vcombine.high %v1383_v16, %v1385_v17 }
  0x88   : > { %369 = vmatpush1.bf16.msra.mxu1 %v815_v36 }
  0x89   : > { %239 = vmatpush1.bf16.msra.mxu0 %v807_v39  ;;  %v826_v39 = vcombine.low %v1399_v24, %v1401_v25  ;;  %370 = vmatprep.subr.bf16.mxu1 %v818_v38 }
  0x8a   : > { %449 = vmatprep.subr.bf16.mxu0 %v821_v58 }
  0x8c   : > { %809 = vmatmul.mubr.msk.bf16.vlgmr.msra.gmra.mrb[0].mxu0 %vm132_vm0, %v187_v40  ;;  %v817_v40 = vcombine.low %v1383_v16, %v1385_v17 }
  0x8d   : > { %481 = vmatprep.mubr.bf16.mxu0 %v1170_v35  ;;  %450 = vmatpush1.bf16.msra.mxu0 %v820_v60  ;;  %v824_v35 = vcombine.low %v1395_v22, %v1397_v23 }
  0x8e   : > { %451 = vmatprep.subr.bf16.mxu0 %v823_v62  ;;  %371 = vmatpush1.bf16.msra.mxu1 %v817_v40 }
  0x91   : > { %452 = vmatpush1.bf16.msra.mxu0 %v822_v29 }
  0x92   : > { %453 = vmatprep.subr.bf16.mxu0 %v825_v32 }
  0x95   : > { %454 = vmatpush1.bf16.msra.mxu0 %v824_v35 }
  0x96   : > { %455 = vmatprep.subr.bf16.mxu0 %v827_v37 }
  0x99   : > { %456 = vmatpush1.bf16.msra.mxu0 %v826_v39 }
  0x9c   : > { %828 = vmatmul.mubr.msk.bf16.vlgmr.msra.gmra.mrb[4].mxu0 %vm132_vm0, %v405_v41 }
  0xed   : > { %v296_v43 = vpop.permute.xlu1 %295 }
  0xfe   : > { %v303_v42 = vpop.permute.xlu0 %302 }
  0xff   : > { %vm304_vm2 = vcmp.eq.s32.totalorder %v303_v42, 1 }
 0x15f   : > { %v266_v45 = vpop.f32.mrb[0].mxu0 }
 0x160   : > { %v273_v46 = vadd.f32 %v266_v45, %v185_v44  ;;  %v268_v47 = vpop.f32.mrb[1].mxu0 }
 0x161   : > { %v270_v48 = vpop.f32.mrb[2].mxu0  ;;  %v284_v55 = vadd.f32 %v1406_v26, %v268_v47 }
 0x162   : > { %v274_v49 = vmul.f32 0.5, %v273_v46  ;;  %v271_v50 = vpop.f32.mrb[3].mxu0 }
 0x164   : > { %947 = vtanh.f32 %v274_v49 }
 0x16e   : > { %v948_v51 = vpop.eup %947 }
 0x16f   : > { %v276_v52 = vmul.f32 0.5, %v948_v51 }
 0x171   : > { %v277_v54 = vadd.f32 0.5, %v276_v52  ;;  %v483_v52 = vpop.f32.mrb[4].mxu0 }
 0x173   : > { %v285_v56 = vmul.f32 %v284_v55, %v277_v54  ;;  %v288_v44 = vsub.f32 1.0, %v277_v54  ;;  %v298_v46 = vmul.f32 %v296_v43, %v277_v54 }
 0x175   : > { %v286_v57 = vadd.f32 %v285_v56, %v186_v53  ;;  %v485_v53 = vpop.f32.mrb[5].mxu0 }
 0x176   : > { %v487_v55 = vpop.f32.mrb[6].mxu0  ;;  %v501_v37 = vadd.f32 %v1416_v28, %v485_v53 }
 0x177   : > { %949 = vtanh.f32 %v286_v57  ;;  %v488_v56 = vpop.f32.mrb[7].mxu0  ;;  %v308_v57 = vlaneseq }
 0x179   : > { %v309_v54 = vshrl.u32 %v308_v57, 7 }
 0x17b   : > { %v310_v58 = vsub.s32 0, %v309_v54 }
 0x17d   : > { %v311_v59 = vrot.slane %v1411_v27, %v310_v58 }
 0x181   : > { %v950_v34 = vpop.eup %949 }
 0x182   : > { %290 = vrot.lane.b32.xlu0 %v950_v34, %s1171_s0 }
 0x1f4   : > { %v291_v45 = vpop.permute.xlu0 %290 }
 0x1f5   : > { %v293_v47 = vmul.f32 %v291_v45, %v288_v44 }
 0x1f7   : > { %v299_v48 = vadd.f32 %v298_v46, %v293_v47 }
 0x1f9   : > { %v305_v49 = vsel %vm304_vm2, %v299_v48, %v296_v43 }
 0x1fa   : > { %v306_v50 = vpack.c.bf16 %v305_v49, %v305_v49 }
 0x1fc   : > { %319 = vrot.lane.b32.xlu1 %v306_v50, %s1171_s0 }
 0x200   : > { %512 = vrot.lane.b32.xlu1 %v1149_v30, %s1171_s0  ;;  %v314_v30 = vsub.s32 1, %v309_v54 }
 0x202   : > { %v315_v35 = vrot.slane %v1411_v27, %v314_v30 }
 0x26e   : > { %v320_v51 = vpop.permute.xlu1 %319 }
 0x26f   : > { %819 = vmatmul.mubr.msk.bf16.vlgmr.msra.gmra.mrb[0].mxu1 %vm132_vm0, %v320_v51 }
 0x272   : > { %v513_v43 = vpop.permute.xlu1 %512 }
 0x342   : > { %v398_v60 = vpop.f32.mrb[0].mxu1 }
 0x343   : > { %v399_v61 = vadd.f32 %v398_v60, %v311_v59  ;;  %v400_v62 = vpop.f32.mrb[1].mxu1 }
 0x344   : > { %v402_v63 = vpop.f32.mrb[2].mxu1  ;;  %v401_v39 = vadd.f32 %v400_v62, %v315_v35 }
 0x345   : > { %v490_v29 = vadd.f32 %v483_v52, %v399_v61  ;;  %v403_v31 = vpop.f32.mrb[3].mxu1 }
 0x347   : > { %v491_v32 = vmul.f32 0.5, %v490_v29 }
 0x349   : > { %951 = vtanh.f32 %v491_v32 }
 0x353   : > { %v952_v33 = vpop.eup %951 }
 0x354   : > { %v493_v34 = vmul.f32 0.5, %v952_v33 }
 0x356   : > { %v494_v36 = vadd.f32 0.5, %v493_v34 }
 0x358   : > { %v502_v38 = vmul.f32 %v501_v37, %v494_v36  ;;  %v505_v44 = vsub.f32 1.0, %v494_v36  ;;  %v515_v46 = vmul.f32 %v513_v43, %v494_v36 }
 0x35a   : > { %v503_v40 = vadd.f32 %v502_v38, %v401_v39 }
 0x35c   : > { %953 = vtanh.f32 %v503_v40 }
 0x366   : > { %v954_v41 = vpop.eup %953 }
 0x367   : > { %507 = vrot.lane.b32.xlu0 %v954_v41, %s1171_s0 }
 0x36b   : > { %519 = vrot.lane.b32.xlu0 %v305_v49, %s1171_s0 }
 0x3d9   : > { %v508_v45 = vpop.permute.xlu0 %507 }
 0x3da   : > { %v510_v47 = vmul.f32 %v508_v45, %v505_v44 }
 0x3dc   : > { %v516_v48 = vadd.f32 %v515_v46, %v510_v47 }
 0x3dd   : > { %v520_v50 = vpop.permute.xlu0 %519  }
 0x3de   : > { %v517_v51 = vsel %vm304_vm2, %v516_v48, %v513_v43  ;;  %v1566_v29 = vmov %v520_v50  ;;  %527 = vst.msk [vmem:[#allocation2] sm:$0xff] (%p172_p7), %vm132_vm0, %v520_v50 }
 0x3df   : > { %523 = vrot.lane.b32.xlu1 %v517_v51, %s1171_s0 }
 0x44c   :  { %174 = sbr.rel (!%p172_p7) target bundleno = 122 (0x7a), region = 112 }
 0x451   : > { %v524_v52 = vpop.permute.xlu1 %523  }
 0x452   : > { %v1565_v30 = vmov %v524_v52  ;;  %528 = vst.msk [vmem:[#allocation3] sm:$0xff] (%p172_p7), %vm132_vm0, %v524_v52 }
 0x453 PF:  { %867 = vmatprep.subr.bf16.mxu0 %v1169_v0  ;;  %887 = vmatprep.subr.bf16.mxu1 %v1169_v0  ;;  %v955_v49 = vld [vmem:[#allocation14] sm:$0xff]   ;;  %vm1172_vm3 = vmmov 0   ;;  %v956_v53 = vld [vmem:[#allocation14 + $0x8] sm:$0xff]   ;;  %v957_v1 = vld [vmem:[#allocation14 + $0x10] sm:$0xff]   ;;  %s1173_s23 = smov [#allocation17]  }
 0x454   :  { %883 = vmatprep.mubr.msk.bf16.mxu0 %vm1172_vm3, %v1169_v0  ;;  %903 = vmatprep.mubr.msk.bf16.mxu1 %vm1172_vm3, %v1169_v0  ;;  %v963_v2 = vld [vmem:[#allocation15] sm:$0xff]   ;;  %v958_v3 = vld [vmem:[#allocation14 + $0x18] sm:$0xff]   ;;  %v964_v4 = vld [vmem:[#allocation15 + $0x8] sm:$0xff]   ;;  %s772_s24 = sshll.u32 %s1173_s23, 4  ;;  %s773_s24 = int_to_ptr.vmem [resolvable:$true] %s772_s24 }
 0x455   :  { %868 = vmatpush3.bf16.msra.mxu0 %v955_v49  ;;  %888 = vmatpush3.bf16.msra.mxu1 %v963_v2  ;;  %v959_v5 = vld [vmem:[#allocation14 + $0x20] sm:$0xff]   ;;  %v965_v6 = vld [vmem:[#allocation15 + $0x10] sm:$0xff]   ;;  %v960_v7 = vld [vmem:[#allocation14 + $0x28] sm:$0xff]   ;;  %p1108_p9 = scmp.lt.s32.totalorder %s773_s24, %s773_s24 }
 0x456   :  { %869 = vmatprep.subr.bf16.mxu0 %v1169_v0  ;;  %889 = vmatprep.subr.bf16.mxu1 %v1169_v0  ;;  %v966_v8 = vld [vmem:[#allocation15 + $0x18] sm:$0xff]   ;;  %v961_v9 = vld [vmem:[#allocation14 + $0x30] sm:$0xff]   ;;  %v967_v10 = vld [vmem:[#allocation15 + $0x20] sm:$0xff]  }
 0x457   :  { %v962_v11 = vld [vmem:[#allocation14 + $0x38] sm:$0xff]   ;;  %v968_v12 = vld [vmem:[#allocation15 + $0x28] sm:$0xff]   ;;  %v532_v13 = vld [vmem:[#allocation2] sm:$0xff] }
 0x458   :  { %v969_v17 = vld [vmem:[#allocation15 + $0x30] sm:$0xff]   ;;  %v970_v18 = vld [vmem:[#allocation15 + $0x38] sm:$0xff]  }
 0x459   :  { %v533_v42 = vld [vmem:[#allocation3] sm:$0xff]  ;;  %870 = vmatpush3.bf16.msra.mxu0 %v956_v53  ;;  %890 = vmatpush3.bf16.msra.mxu1 %v964_v4  ;;  %v830_v19 = vld [vmem:[%s1561_s10] ss:$0 sm:$0xff]  ;;  %s1103_s10 = scalar_lea.vmem %s773_s24, 128 }
 0x45a   :  { %535 = vrot.lane.b32.xlu0 %v533_v42, %s1166_s5  ;;  %871 = vmatprep.subr.bf16.mxu0 %v1169_v0  ;;  %v839_v27 = vld [vmem:[%s1563_s12] ss:$0 sm:$0xff]  ;;  %p1104_p8 = scmp.ne.s32.totalorder %s773_s24, %s1103_s10  ;;  %p1109_p10 = scmp.lt.s32.totalorder %s1103_s10, %s1103_s10 }
 0x45b   :  { %891 = vmatprep.subr.bf16.mxu1 %v1169_v0 }
 0x45c   :  { %p1110_p11 = por %p1109_p10, %p1108_p9 }
 0x45d   :  { %872 = vmatpush3.bf16.msra.mxu0 %v957_v1  ;;  %892 = vmatpush3.bf16.msra.mxu1 %v965_v6 }
 0x45e   :  { %873 = vmatprep.subr.bf16.mxu0 %v1169_v0  ;;  %893 = vmatprep.subr.bf16.mxu1 %v1169_v0  ;;  %p1111_p12 = pnand %p1110_p11, %p1104_p8 }
 0x461   :  { %874 = vmatpush3.bf16.msra.mxu0 %v958_v3  ;;  %894 = vmatpush3.bf16.msra.mxu1 %v966_v8 }
 0x462   :  { %875 = vmatprep.subr.bf16.mxu0 %v1169_v0  ;;  %895 = vmatprep.subr.bf16.mxu1 %v1169_v0 }
 0x465   :  { %876 = vmatpush3.bf16.msra.mxu0 %v959_v5  ;;  %896 = vmatpush3.bf16.msra.mxu1 %v967_v10 }
 0x466   :  { %877 = vmatprep.subr.bf16.mxu0 %v1169_v0  ;;  %897 = vmatprep.subr.bf16.mxu1 %v1169_v0 }
 0x469   :  { %878 = vmatpush3.bf16.msra.mxu0 %v960_v7  ;;  %898 = vmatpush3.bf16.msra.mxu1 %v968_v12 }
 0x46a   :  { %879 = vmatprep.subr.bf16.mxu0 %v1169_v0  ;;  %899 = vmatprep.subr.bf16.mxu1 %v1169_v0 }
 0x46d   :  { %880 = vmatpush3.bf16.msra.mxu0 %v961_v9  ;;  %900 = vmatpush3.bf16.msra.mxu1 %v969_v17 }
 0x46e   :  { %881 = vmatprep.subr.bf16.mxu0 %v1169_v0  ;;  %901 = vmatprep.subr.bf16.mxu1 %v1169_v0 }
 0x471   :  { %882 = vmatpush3.bf16.msra.mxu0 %v962_v11  ;;  %902 = vmatpush3.bf16.msra.mxu1 %v970_v18 }
 0x4cc   :  { %v536_v14 = vpop.permute.xlu0 %535 }
 0x4cd   :  { %v539_v15 = vsel %vm132_vm0, %v532_v13, %v536_v14 }
 0x4ce   :  { %v540_v16 = vpack.c.bf16 %v539_v15, %v539_v15 }
 0x4d0   :  { %884 = vmatmul.mubr.bf16.vlgmr.msra.gmra.mrb[0].mxu0 %v540_v16 }
 0x5a3   :  { %v646_v20 = vpop.f32.mrb[0].mxu0 }
 0x5a4   :  { %v647_v21 = vadd.f32 %v830_v19, %v646_v20  ;;  %v885_v22 = vpop.f32.mrb[1].mxu0 }
 0x5a5   :  { %v649_v23 = vpop.f32.mrb[2].mxu0 }
 0x5a6   :  { %v652_v24 = vmax.f32 %v647_v21, 0.0  ;;  %v886_v25 = vpop.f32.mrb[3].mxu0 }
 0x5a8   :  { %v653_v26 = vpack.c.bf16 %v652_v24, %v652_v24 }
 0x5aa   :  { %904 = vmatmul.mubr.bf16.vlgmr.msra.gmra.mrb[0].mxu1 %v653_v26 }
 0x67d   :  { %v759_v0 = vpop.f32.mrb[0].mxu1 }
 0x67e   :  { %v760_v28 = vadd.f32 %v839_v27, %v759_v0  ;;  %v905_v55 = vpop.f32.mrb[1].mxu1 }
 0x67f   :  { %v762_v56 = vpop.f32.mrb[2].mxu1 }
 0x680   :  { %765 = vst [vmem:[#allocation17] sm:$0xff] %v760_v28  ;;  %v906_v57 = vpop.f32.mrb[3].mxu1 }
 0x681   :  { %1114 = shalt.err (!%p1111_p12)
}
 0x682   :  { %s1115_s12 = scalar_lea.hbm %s1564_s13, 128 }
 0x683   :  { %p1116_p13 = scmp.ne.s32.totalorder %s1564_s13, %s1115_s12  ;;  %p1119_p0 = scmp.lt.u32.totalorder %s1115_s12, %s1564_s13 }
 0x685   :  { %p1121_p1 = pnand %p1119_p0, %p1116_p13 }
 0x687   :  { %1124 = shalt.err (!%p1121_p1)
}
 0x688   :  { %775 = dma.vmem_to_hbm [thread:$0]  %s773_s24, 128, %s1564_s13, [#allocation8]  }
 0x689   :  { %1145 = dma.done.wait [#allocation8], 128  }
 0x68a   :  { %1146 = vsyncadd [#allocation8], 4294967168 }
 0x68b   :  { %779 = vsyncpa [#allocation7], 1 }
 0x68c   :  { %780 = vsyncpa [#allocation10], 1 }
 0x68d   :  { %781 = vsyncpa [#allocation13], 1 }
 0x68e   :  { %782 = vsyncpa [#allocation16], 1 }
 0x68f   :  { %783 = vsyncpa [#allocation8], 1 }

</bundles_post_ra>
